<compile_context>
chip_gen: v7x
topology: tpu7x:2x2x1
jax: 0.10.0
libtpu: 0.0.40
codegen_flags: <defaults>
</compile_context>

<pallas_src>
import math

import jax
import jax.numpy as jnp
from jax.experimental import pallas as pl
from jax.experimental.pallas import tpu as pltpu  # noqa: F401  (TPU backend assumed)

# --- small shapes consistent with the module -----------------------------------
B = 2              # batch
N = 8              # query set size
M = 8              # key set size
D = 32             # dim_Q == dim_K == dim_V (latent size)
H = 4              # num_heads
DH = D // H        # per-head dim
SCALE = 1.0 / math.sqrt(D)   # module divides by sqrt(latent_size), not sqrt(DH)

BN = B * N
BM = B * M
NEG = -1e30        # finite "-inf" for the batch block mask


# --- kernel ---------------------------------------------------------------------
def mha_kernel(x_ref, w_ref, b_ref, o_ref):
    """x_ref: (BN+BM, D) = [Q rows ; K rows]
       w_ref: (D, 4D)    = [wq*SCALE | wk | wv | wo]
       b_ref: (1, 4D)    = [bq*SCALE | bk | bv | bo]
       o_ref: (BN, D)"""
    x = x_ref[...]
    w = w_ref[...]
    b = b_ref[...]

    # One MXU push projects Q-rows through wq and K-rows through wk/wv.
    # (The unused cross blocks — K@wq, Q@wk, x@wo — are simply never read.)
    proj = jnp.dot(x, w, preferred_element_type=jnp.float32) + b      # (BN+BM, 4D)

    # Block mask restricting each query row to keys of its own batch element.
    # Built from 2-D iotas + comparisons only (no vector integer division).
    qi = jax.lax.broadcasted_iota(jnp.int32, (BN, BM), 0)
    ki = jax.lax.broadcasted_iota(jnp.int32, (BN, BM), 1)
    same_batch = None
    for b_ in range(B):                                   # static, B is tiny
        in_q = (qi >= b_ * N) & (qi < (b_ + 1) * N)
        in_k = (ki >= b_ * M) & (ki < (b_ + 1) * M)
        blk = in_q & in_k
        same_batch = blk if same_batch is None else (same_batch | blk)

    out = jnp.zeros((BN, D), jnp.float32)
    for h in range(H):                                    # static unroll over heads
        lo = h * DH
        hi = lo + DH
        qh = proj[:BN, lo:hi]                             # (BN, DH), scale pre-baked
        kh = proj[BN:, D + lo:D + hi]                     # (BM, DH)
        vh = proj[BN:, 2 * D + lo:2 * D + hi]             # (BM, DH)

        # scores for BOTH batches at once; cross-batch entries masked out
        s = jax.lax.dot_general(qh, kh, (((1,), (1,)), ((), ())),
                                preferred_element_type=jnp.float32)   # (BN, BM)
        s = jnp.where(same_batch, s, NEG)
        s = s - jnp.max(s, axis=-1, keepdims=True)        # torch.softmax(dim=3)
        e = jnp.exp(s)
        a = e * pl.reciprocal(jnp.sum(e, axis=-1, keepdims=True), approx=True)

        oh = jnp.dot(a, vh, preferred_element_type=jnp.float32)       # (BN, DH)
        # Fold this head's slice of w_o in directly (no lane-axis concat of heads).
        out = out + jnp.dot(oh, w[lo:hi, 3 * D:4 * D],
                            preferred_element_type=jnp.float32)       # (BN, D)

    out = out + b[:, 3 * D:4 * D]                         # + bo
    o_ref[...] = out.astype(o_ref.dtype)
    # TODO(synk): output is (B*N, 32) -> 32-lane masked stores; a lane-dense
    # (B, N*D) layout would need an in-kernel relayout that costs more than it
    # saves at this size.


# --- wrapper ---------------------------------------------------------------------
def mha_forward(Q, K, params):
    """Q: (B, N, D), K: (B, M, D); params = [wq, bq, wk, bk, wv, bv, wo, bo],
    weights stored (in_features, out_features) (i.e. already transposed vs torch)."""
    wq, bq, wk, bk, wv, bv, wo, bo = params
    assert wq.shape[0] == wk.shape[0], "fused projection assumes dim_Q == dim_K"
    # TODO(synk): if dim_Q != dim_K the Q and K projections must be split into two
    # matmuls instead of one stacked slab matmul.

    # Host-side packing: bake the 1/sqrt(latent) scale into the q projection and
    # pack everything into one lane-dense weight slab + one bias slab.
    w_slab = jnp.concatenate([wq * SCALE, wk, wv, wo], axis=1)        # (D, 4D)
    b_slab = jnp.concatenate([bq * SCALE, bk, bv, bo], axis=1)        # (1, 4D)
    x_all = jnp.concatenate([Q.reshape(BN, D), K.reshape(BM, D)], axis=0)

    out = pl.pallas_call(
        mha_kernel,
        out_shape=jax.ShapeDtypeStruct((BN, D), jnp.float32),
        # no grid / no BlockSpecs: whole ~40 KB problem is one VMEM-resident block
    )(x_all, w_slab, b_slab)
    return out.reshape(B, N, D)


# --- pure-JAX reference (mirrors MHA._mha with mask=None) --------------------------
def reference(Q, K, params):
    wq, bq, wk, bk, wv, bv, wo, bo = params
    Q_ = Q @ wq + bq
    K_ = K @ wk + bk
    V_ = K @ wv + bv
    qh = jnp.stack(jnp.split(Q_, H, axis=2), 0)           # (H, B, N, DH)
    kh = jnp.stack(jnp.split(K_, H, axis=2), 0)
    vh = jnp.stack(jnp.split(V_, H, axis=2), 0)
    E = jnp.einsum('hbnd,hbmd->hbnm', qh, kh) / math.sqrt(D)
    A = jax.nn.softmax(E, axis=3)
    O = jnp.einsum('hbnm,hbmd->hbnd', A, vh)
    O = jnp.concatenate(jnp.split(O, H, axis=0), axis=3).squeeze(0)   # (B, N, D)
    return O @ wo + bo


# --- params + run ------------------------------------------------------------------
def init_params(key):
    ks = jax.random.split(key, 8)

    def lin(kw, kb, fan_in, fan_out):          # nn.Linear default init
        bound = 1.0 / math.sqrt(fan_in)
        w = jax.random.uniform(kw, (fan_in, fan_out), jnp.float32, -bound, bound)
        b = jax.random.uniform(kb, (1, fan_out), jnp.float32, -bound, bound)
        return w, b

    wq, bq = lin(ks[0], ks[1], D, D)
    wk, bk = lin(ks[2], ks[3], D, D)
    wv, bv = lin(ks[4], ks[5], D, D)
    wo, bo = lin(ks[6], ks[7], D, D)
    return [wq, bq, wk, bk, wv, bv, wo, bo]


if __name__ == "__main__":
    key = jax.random.PRNGKey(0)
    kq, kk, kp = jax.random.split(key, 3)
    Q = jax.random.normal(kq, (B, N, D), jnp.float32)
    K = jax.random.normal(kk, (B, M, D), jnp.float32)
    params = init_params(kp)

    out = jax.block_until_ready(mha_forward(Q, K, params))
    ref = jax.block_until_ready(reference(Q, K, params))

    assert out.shape == (B, N, D)
    err = float(jnp.max(jnp.abs(out - ref)))
    # loose-ish tolerance: pl.reciprocal(approx=True) in the softmax is ~1e-4 rel.
    assert err < 2e-2, f"max abs err {err}"

    print("KERNEL_OK")
</pallas_src>

<mosaic_0001>
module attributes {stable_mosaic.version = 11 : i64} {
  func.func @mha_kernel(%arg0: memref<32x32xf32, #tpu.memory_space<vmem>>, %arg1: memref<32x128xf32, #tpu.memory_space<vmem>>, %arg2: memref<1x128xf32, #tpu.memory_space<vmem>>, %arg3: memref<16x32xf32, #tpu.memory_space<vmem>>) attributes {dimension_semantics = [], scalar_prefetch = 0 : i64, scratch_operands = 0 : i64, tpu.core_type = #tpu.core_type<tc>} {
    %c0 = arith.constant 0 : index
    %c0_0 = arith.constant 0 : index
    %0 = vector.load %arg0[%c0, %c0_0] : memref<32x32xf32, #tpu.memory_space<vmem>>, vector<32x32xf32>
    %c0_1 = arith.constant 0 : index
    %c0_2 = arith.constant 0 : index
    %1 = vector.load %arg1[%c0_1, %c0_2] : memref<32x128xf32, #tpu.memory_space<vmem>>, vector<32x128xf32>
    %c0_3 = arith.constant 0 : index
    %c0_4 = arith.constant 0 : index
    %2 = vector.load %arg2[%c0_3, %c0_4] : memref<1x128xf32, #tpu.memory_space<vmem>>, vector<1x128xf32>
    %cst = arith.constant dense<0.000000e+00> : vector<32x128xf32>
    %3 = tpu.matmul %0, %1, %cst {dimension_numbers = #tpu.dot_dimension_numbers<[1], [0], [0], [1], [0, 0, 1, 1], [], []>} : vector<32x32xf32>, vector<32x128xf32>, vector<32x128xf32> -> vector<32x128xf32>
    %4 = vector.broadcast %2 : vector<1x128xf32> to vector<32x128xf32>
    %5 = arith.addf %3, %4 : vector<32x128xf32>
    %6 = tpu.iota {dimensions = array<i32: 0>} : vector<16x16xi32>
    %7 = tpu.iota {dimensions = array<i32: 1>} : vector<16x16xi32>
    %c0_i32 = arith.constant 0 : i32
    %8 = vector.broadcast %c0_i32 : i32 to vector<16x16xi32>
    %9 = arith.cmpi sge, %6, %8 : vector<16x16xi32>
    %c8_i32 = arith.constant 8 : i32
    %10 = vector.broadcast %c8_i32 : i32 to vector<16x16xi32>
    %11 = arith.cmpi slt, %6, %10 : vector<16x16xi32>
    %12 = arith.andi %9, %11 : vector<16x16xi1>
    %c0_i32_5 = arith.constant 0 : i32
    %13 = vector.broadcast %c0_i32_5 : i32 to vector<16x16xi32>
    %14 = arith.cmpi sge, %7, %13 : vector<16x16xi32>
    %c8_i32_6 = arith.constant 8 : i32
    %15 = vector.broadcast %c8_i32_6 : i32 to vector<16x16xi32>
    %16 = arith.cmpi slt, %7, %15 : vector<16x16xi32>
    %17 = arith.andi %14, %16 : vector<16x16xi1>
    %18 = arith.andi %12, %17 : vector<16x16xi1>
    %c8_i32_7 = arith.constant 8 : i32
    %19 = vector.broadcast %c8_i32_7 : i32 to vector<16x16xi32>
    %20 = arith.cmpi sge, %6, %19 : vector<16x16xi32>
    %c16_i32 = arith.constant 16 : i32
    %21 = vector.broadcast %c16_i32 : i32 to vector<16x16xi32>
    %22 = arith.cmpi slt, %6, %21 : vector<16x16xi32>
    %23 = arith.andi %20, %22 : vector<16x16xi1>
    %c8_i32_8 = arith.constant 8 : i32
    %24 = vector.broadcast %c8_i32_8 : i32 to vector<16x16xi32>
    %25 = arith.cmpi sge, %7, %24 : vector<16x16xi32>
    %c16_i32_9 = arith.constant 16 : i32
    %26 = vector.broadcast %c16_i32_9 : i32 to vector<16x16xi32>
    %27 = arith.cmpi slt, %7, %26 : vector<16x16xi32>
    %28 = arith.andi %25, %27 : vector<16x16xi1>
    %29 = arith.andi %23, %28 : vector<16x16xi1>
    %30 = arith.ori %18, %29 : vector<16x16xi1>
    %cst_10 = arith.constant 0.000000e+00 : f32
    %31 = vector.broadcast %cst_10 : f32 to vector<16x32xf32>
    %32 = vector.extract_strided_slice %5 {offsets = [0, 0], sizes = [16, 8], strides = [1, 1]} : vector<32x128xf32> to vector<16x8xf32>
    %33 = vector.extract_strided_slice %5 {offsets = [16, 32], sizes = [16, 8], strides = [1, 1]} : vector<32x128xf32> to vector<16x8xf32>
    %34 = vector.extract_strided_slice %5 {offsets = [16, 64], sizes = [16, 8], strides = [1, 1]} : vector<32x128xf32> to vector<16x8xf32>
    %cst_11 = arith.constant dense<0.000000e+00> : vector<16x16xf32>
    %35 = tpu.matmul %32, %33, %cst_11 {dimension_numbers = #tpu.dot_dimension_numbers<[1], [1], [0], [0], [0, 0, 1, 0], [], []>} : vector<16x8xf32>, vector<16x8xf32>, vector<16x16xf32> -> vector<16x16xf32>
    %cst_12 = arith.constant -1.000000e+30 : f32
    %36 = vector.broadcast %cst_12 : f32 to vector<16x16xf32>
    %37 = arith.select %30, %35, %36 : vector<16x16xi1>, vector<16x16xf32>
    %cst_13 = arith.constant dense<0xFF800000> : vector<16xf32>
    %38 = vector.multi_reduction <maximumf>, %37, %cst_13 [1] : vector<16x16xf32> to vector<16xf32>
    %39 = vector.shape_cast %38 : vector<16xf32> to vector<16x1xf32>
    %40 = vector.broadcast %39 : vector<16x1xf32> to vector<16x16xf32>
    %41 = arith.subf %37, %40 : vector<16x16xf32>
    %42 = math.exp %41 : vector<16x16xf32>
    %cst_14 = arith.constant dense<0.000000e+00> : vector<16xf32>
    %43 = vector.multi_reduction <add>, %42, %cst_14 [1] : vector<16x16xf32> to vector<16xf32>
    %44 = vector.shape_cast %43 : vector<16xf32> to vector<16x1xf32>
    %45 = tpu.reciprocal %44 {approx = true} : vector<16x1xf32> -> vector<16x1xf32>
    %46 = vector.broadcast %45 : vector<16x1xf32> to vector<16x16xf32>
    %47 = arith.mulf %42, %46 : vector<16x16xf32>
    %cst_15 = arith.constant dense<0.000000e+00> : vector<16x8xf32>
    %48 = tpu.matmul %47, %34, %cst_15 {dimension_numbers = #tpu.dot_dimension_numbers<[1], [0], [0], [1], [0, 0, 1, 1], [], []>} : vector<16x16xf32>, vector<16x8xf32>, vector<16x8xf32> -> vector<16x8xf32>
    %49 = vector.extract_strided_slice %1 {offsets = [0, 96], sizes = [8, 32], strides = [1, 1]} : vector<32x128xf32> to vector<8x32xf32>
    %cst_16 = arith.constant dense<0.000000e+00> : vector<16x32xf32>
    %50 = tpu.matmul %48, %49, %cst_16 {dimension_numbers = #tpu.dot_dimension_numbers<[1], [0], [0], [1], [0, 0, 1, 1], [], []>} : vector<16x8xf32>, vector<8x32xf32>, vector<16x32xf32> -> vector<16x32xf32>
    %51 = arith.addf %31, %50 : vector<16x32xf32>
    %52 = vector.extract_strided_slice %5 {offsets = [0, 8], sizes = [16, 8], strides = [1, 1]} : vector<32x128xf32> to vector<16x8xf32>
    %53 = vector.extract_strided_slice %5 {offsets = [16, 40], sizes = [16, 8], strides = [1, 1]} : vector<32x128xf32> to vector<16x8xf32>
    %54 = vector.extract_strided_slice %5 {offsets = [16, 72], sizes = [16, 8], strides = [1, 1]} : vector<32x128xf32> to vector<16x8xf32>
    %cst_17 = arith.constant dense<0.000000e+00> : vector<16x16xf32>
    %55 = tpu.matmul %52, %53, %cst_17 {dimension_numbers = #tpu.dot_dimension_numbers<[1], [1], [0], [0], [0, 0, 1, 0], [], []>} : vector<16x8xf32>, vector<16x8xf32>, vector<16x16xf32> -> vector<16x16xf32>
    %cst_18 = arith.constant -1.000000e+30 : f32
    %56 = vector.broadcast %cst_18 : f32 to vector<16x16xf32>
    %57 = arith.select %30, %55, %56 : vector<16x16xi1>, vector<16x16xf32>
    %cst_19 = arith.constant dense<0xFF800000> : vector<16xf32>
    %58 = vector.multi_reduction <maximumf>, %57, %cst_19 [1] : vector<16x16xf32> to vector<16xf32>
    %59 = vector.shape_cast %58 : vector<16xf32> to vector<16x1xf32>
    %60 = vector.broadcast %59 : vector<16x1xf32> to vector<16x16xf32>
    %61 = arith.subf %57, %60 : vector<16x16xf32>
    %62 = math.exp %61 : vector<16x16xf32>
    %cst_20 = arith.constant dense<0.000000e+00> : vector<16xf32>
    %63 = vector.multi_reduction <add>, %62, %cst_20 [1] : vector<16x16xf32> to vector<16xf32>
    %64 = vector.shape_cast %63 : vector<16xf32> to vector<16x1xf32>
    %65 = tpu.reciprocal %64 {approx = true} : vector<16x1xf32> -> vector<16x1xf32>
    %66 = vector.broadcast %65 : vector<16x1xf32> to vector<16x16xf32>
    %67 = arith.mulf %62, %66 : vector<16x16xf32>
    %cst_21 = arith.constant dense<0.000000e+00> : vector<16x8xf32>
    %68 = tpu.matmul %67, %54, %cst_21 {dimension_numbers = #tpu.dot_dimension_numbers<[1], [0], [0], [1], [0, 0, 1, 1], [], []>} : vector<16x16xf32>, vector<16x8xf32>, vector<16x8xf32> -> vector<16x8xf32>
    %69 = vector.extract_strided_slice %1 {offsets = [8, 96], sizes = [8, 32], strides = [1, 1]} : vector<32x128xf32> to vector<8x32xf32>
    %cst_22 = arith.constant dense<0.000000e+00> : vector<16x32xf32>
    %70 = tpu.matmul %68, %69, %cst_22 {dimension_numbers = #tpu.dot_dimension_numbers<[1], [0], [0], [1], [0, 0, 1, 1], [], []>} : vector<16x8xf32>, vector<8x32xf32>, vector<16x32xf32> -> vector<16x32xf32>
    %71 = arith.addf %51, %70 : vector<16x32xf32>
    %72 = vector.extract_strided_slice %5 {offsets = [0, 16], sizes = [16, 8], strides = [1, 1]} : vector<32x128xf32> to vector<16x8xf32>
    %73 = vector.extract_strided_slice %5 {offsets = [16, 48], sizes = [16, 8], strides = [1, 1]} : vector<32x128xf32> to vector<16x8xf32>
    %74 = vector.extract_strided_slice %5 {offsets = [16, 80], sizes = [16, 8], strides = [1, 1]} : vector<32x128xf32> to vector<16x8xf32>
    %cst_23 = arith.constant dense<0.000000e+00> : vector<16x16xf32>
    %75 = tpu.matmul %72, %73, %cst_23 {dimension_numbers = #tpu.dot_dimension_numbers<[1], [1], [0], [0], [0, 0, 1, 0], [], []>} : vector<16x8xf32>, vector<16x8xf32>, vector<16x16xf32> -> vector<16x16xf32>
    %cst_24 = arith.constant -1.000000e+30 : f32
    %76 = vector.broadcast %cst_24 : f32 to vector<16x16xf32>
    %77 = arith.select %30, %75, %76 : vector<16x16xi1>, vector<16x16xf32>
    %cst_25 = arith.constant dense<0xFF800000> : vector<16xf32>
    %78 = vector.multi_reduction <maximumf>, %77, %cst_25 [1] : vector<16x16xf32> to vector<16xf32>
    %79 = vector.shape_cast %78 : vector<16xf32> to vector<16x1xf32>
    %80 = vector.broadcast %79 : vector<16x1xf32> to vector<16x16xf32>
    %81 = arith.subf %77, %80 : vector<16x16xf32>
    %82 = math.exp %81 : vector<16x16xf32>
    %cst_26 = arith.constant dense<0.000000e+00> : vector<16xf32>
    %83 = vector.multi_reduction <add>, %82, %cst_26 [1] : vector<16x16xf32> to vector<16xf32>
    %84 = vector.shape_cast %83 : vector<16xf32> to vector<16x1xf32>
    %85 = tpu.reciprocal %84 {approx = true} : vector<16x1xf32> -> vector<16x1xf32>
    %86 = vector.broadcast %85 : vector<16x1xf32> to vector<16x16xf32>
    %87 = arith.mulf %82, %86 : vector<16x16xf32>
    %cst_27 = arith.constant dense<0.000000e+00> : vector<16x8xf32>
    %88 = tpu.matmul %87, %74, %cst_27 {dimension_numbers = #tpu.dot_dimension_numbers<[1], [0], [0], [1], [0, 0, 1, 1], [], []>} : vector<16x16xf32>, vector<16x8xf32>, vector<16x8xf32> -> vector<16x8xf32>
    %89 = vector.extract_strided_slice %1 {offsets = [16, 96], sizes = [8, 32], strides = [1, 1]} : vector<32x128xf32> to vector<8x32xf32>
    %cst_28 = arith.constant dense<0.000000e+00> : vector<16x32xf32>
    %90 = tpu.matmul %88, %89, %cst_28 {dimension_numbers = #tpu.dot_dimension_numbers<[1], [0], [0], [1], [0, 0, 1, 1], [], []>} : vector<16x8xf32>, vector<8x32xf32>, vector<16x32xf32> -> vector<16x32xf32>
    %91 = arith.addf %71, %90 : vector<16x32xf32>
    %92 = vector.extract_strided_slice %5 {offsets = [0, 24], sizes = [16, 8], strides = [1, 1]} : vector<32x128xf32> to vector<16x8xf32>
    %93 = vector.extract_strided_slice %5 {offsets = [16, 56], sizes = [16, 8], strides = [1, 1]} : vector<32x128xf32> to vector<16x8xf32>
    %94 = vector.extract_strided_slice %5 {offsets = [16, 88], sizes = [16, 8], strides = [1, 1]} : vector<32x128xf32> to vector<16x8xf32>
    %cst_29 = arith.constant dense<0.000000e+00> : vector<16x16xf32>
    %95 = tpu.matmul %92, %93, %cst_29 {dimension_numbers = #tpu.dot_dimension_numbers<[1], [1], [0], [0], [0, 0, 1, 0], [], []>} : vector<16x8xf32>, vector<16x8xf32>, vector<16x16xf32> -> vector<16x16xf32>
    %cst_30 = arith.constant -1.000000e+30 : f32
    %96 = vector.broadcast %cst_30 : f32 to vector<16x16xf32>
    %97 = arith.select %30, %95, %96 : vector<16x16xi1>, vector<16x16xf32>
    %cst_31 = arith.constant dense<0xFF800000> : vector<16xf32>
    %98 = vector.multi_reduction <maximumf>, %97, %cst_31 [1] : vector<16x16xf32> to vector<16xf32>
    %99 = vector.shape_cast %98 : vector<16xf32> to vector<16x1xf32>
    %100 = vector.broadcast %99 : vector<16x1xf32> to vector<16x16xf32>
    %101 = arith.subf %97, %100 : vector<16x16xf32>
    %102 = math.exp %101 : vector<16x16xf32>
    %cst_32 = arith.constant dense<0.000000e+00> : vector<16xf32>
    %103 = vector.multi_reduction <add>, %102, %cst_32 [1] : vector<16x16xf32> to vector<16xf32>
    %104 = vector.shape_cast %103 : vector<16xf32> to vector<16x1xf32>
    %105 = tpu.reciprocal %104 {approx = true} : vector<16x1xf32> -> vector<16x1xf32>
    %106 = vector.broadcast %105 : vector<16x1xf32> to vector<16x16xf32>
    %107 = arith.mulf %102, %106 : vector<16x16xf32>
    %cst_33 = arith.constant dense<0.000000e+00> : vector<16x8xf32>
    %108 = tpu.matmul %107, %94, %cst_33 {dimension_numbers = #tpu.dot_dimension_numbers<[1], [0], [0], [1], [0, 0, 1, 1], [], []>} : vector<16x16xf32>, vector<16x8xf32>, vector<16x8xf32> -> vector<16x8xf32>
    %109 = vector.extract_strided_slice %1 {offsets = [24, 96], sizes = [8, 32], strides = [1, 1]} : vector<32x128xf32> to vector<8x32xf32>
    %cst_34 = arith.constant dense<0.000000e+00> : vector<16x32xf32>
    %110 = tpu.matmul %108, %109, %cst_34 {dimension_numbers = #tpu.dot_dimension_numbers<[1], [0], [0], [1], [0, 0, 1, 1], [], []>} : vector<16x8xf32>, vector<8x32xf32>, vector<16x32xf32> -> vector<16x32xf32>
    %111 = arith.addf %91, %110 : vector<16x32xf32>
    %112 = vector.extract_strided_slice %2 {offsets = [0, 96], sizes = [1, 32], strides = [1, 1]} : vector<1x128xf32> to vector<1x32xf32>
    %113 = vector.broadcast %112 : vector<1x32xf32> to vector<16x32xf32>
    %114 = arith.addf %111, %113 : vector<16x32xf32>
    %c0_35 = arith.constant 0 : index
    %c0_36 = arith.constant 0 : index
    %115 = vector.load %arg3[%c0_35, %c0_36] : memref<16x32xf32, #tpu.memory_space<vmem>>, vector<16x32xf32>
    tpu.vector_store %arg3[%c0_35, %c0_36], %114 {strides = array<i32>} : memref<16x32xf32, #tpu.memory_space<vmem>>, vector<16x32xf32>,
    return
  }
}

</mosaic_0001>

<bundles_post_ra>
// kernel: tpu_custom_call.1
= control target key start
LH: loop header
LB: loop body
LE: loop exit
PB: predicated region body
PF: predicated region fallthrough
CT: control target
= control target key end

     0   :  { %8 = vsyncpa [#allocation3], 0  ;;  %s1995_s0 = inlined_call_operand.hbm [shape: f32[32,32], index: 0, kind: input, shape index: {}]   ;;  %s1996_s1 = inlined_call_operand.hbm [shape: f32[32,128], index: 1, kind: input, shape index: {}]   ;;  %s1997_s2 = inlined_call_operand.vmem [shape: f32[1,128], index: 2, kind: input, shape index: {}]   ;;  %s1998_s3 = inlined_call_operand.hbm [shape: f32[16,32], index: 3, kind: output, shape index: {}]  }
   0x1   :  { %9 = vsyncpa [#allocation6], 0 }
   0x2   :  { %10 = vsyncpa [#allocation4], 0  ;;  %s1758_s12 = smov [#allocation2]   ;;  %s1686_s16 = scalar_lea.hbm %s1995_s0, 512 }
   0x3   :  { %s16_s13 = sshll.u32 %s1758_s12, 4  ;;  %p1687_p0 = scmp.ne.s32.totalorder %s1995_s0, %s1686_s16  ;;  %s17_s13 = int_to_ptr.vmem [resolvable:$true] %s16_s13 }
   0x4   :  { %p1690_p1 = scmp.lt.u32.totalorder %s1686_s16, %s1995_s0 }
   0x6   :  { %p1692_p2 = pnand %p1690_p1, %p1687_p0 }
   0x8   :  { %1695 = shalt.err (!%p1692_p2)
}
   0x9   :  { %s1696_s21 = scalar_lea.vmem %s17_s13, 512  ;;  %p1701_p4 = scmp.lt.s32.totalorder %s17_s13, %s17_s13 }
   0xa   :  { %p1697_p3 = scmp.ne.s32.totalorder %s17_s13, %s1696_s21  ;;  %p1702_p5 = scmp.lt.s32.totalorder %s1696_s21, %s1696_s21 }
   0xc   :  { %p1703_p6 = por %p1702_p5, %p1701_p4 }
   0xe   :  { %p1704_p7 = pnand %p1703_p6, %p1697_p3 }
  0x10   :  { %1707 = shalt.err (!%p1704_p7)
}
  0x11   :  { %s1759_s22 = smov 128   ;;  %s1760_s23 = smov 8  }
  0x12   :  { %22 = dma.hbm_to_vmem [thread:$0]  %s1995_s0, 512, %s17_s13, [#allocation3], %s1759_s22, %s1759_s22, %s1760_s23  }
  0x13   :  { %s1761_s26 = smov [#allocation5]   ;;  %s1708_s30 = scalar_lea.hbm %s1996_s1, 512 }
  0x14   :  { %s28_s27 = sshll.u32 %s1761_s26, 4  ;;  %p1709_p8 = scmp.ne.s32.totalorder %s1996_s1, %s1708_s30  ;;  %s29_s27 = int_to_ptr.vmem [resolvable:$true] %s28_s27 }
  0x15   :  { %p1712_p9 = scmp.lt.u32.totalorder %s1708_s30, %s1996_s1 }
  0x17   :  { %p1714_p10 = pnand %p1712_p9, %p1709_p8 }
  0x19   :  { %1717 = shalt.err (!%p1714_p10)
}
  0x1a   :  { %s1718_s8 = scalar_lea.vmem %s29_s27, 512  ;;  %p1723_p12 = scmp.lt.s32.totalorder %s29_s27, %s29_s27 }
  0x1b   :  { %p1719_p11 = scmp.ne.s32.totalorder %s29_s27, %s1718_s8  ;;  %p1724_p13 = scmp.lt.s32.totalorder %s1718_s8, %s1718_s8 }
  0x1d   :  { %p1725_p0 = por %p1724_p13, %p1723_p12 }
  0x1f   :  { %p1726_p1 = pnand %p1725_p0, %p1719_p11 }
  0x21   :  { %1729 = shalt.err (!%p1726_p1)
}
  0x22   :  { %34 = dma.hbm_to_vmem [thread:$0]  %s1996_s1, 512, %s29_s27, [#allocation6], %s1759_s22, %s1759_s22, %s1760_s23  }
  0x23   :  { %1752 = dma.done.wait [#allocation3], 512  }
  0x24   :  { %1753 = vsyncadd [#allocation3], 4294966784 }
  0x25   :  { %1754 = dma.done.wait [#allocation6], 512  }
  0x26   :  { %1755 = vsyncadd [#allocation6], 4294966784  ;;  %vm58_vm0 = vcmask 261120   ;;  %v1825_v0 = vld [vmem:[#allocation5] sm:$0xff]  ;;  %v1827_v1 = vld [vmem:[#allocation5 + $0x8] sm:$0xff]  ;;  %vm191_vm1 = vcmask 64512   ;;  %v159_v31 = vlaneseq }
  0x27   :  { %v1829_v2 = vld [vmem:[#allocation5 + $0x10] sm:$0xff]  ;;  %v1543_v3 = vpack.c.bf16 %v1827_v1, %v1825_v0  ;;  %v1833_v4 = vld [vmem:[#allocation5 + $0x18] sm:$0xff]  ;;  %v43_v5 = vld [vmem:[#allocation2] sm:$0xff]  ;;  %s1762_s11 = smov 120   ;;  %s1764_s12 = smov 88   ;;  %vm279_vm7 = vcmask 130048  }
  0x28   :  { %v1547_v6 = vpack.c.bf16 %v1833_v4, %v1829_v2  ;;  %1461 = vmatprep.mubr.msk.f32.mxu0 %vm58_vm0, %v43_v5  ;;  %v44_v7 = vld [vmem:[#allocation2 + $0x8] sm:$0xff]  ;;  %v45_v8 = vld [vmem:[#allocation2 + $0x10] sm:$0xff]  ;;  %v46_v9 = vld [vmem:[#allocation2 + $0x18] sm:$0xff]  ;;  %v1880_v32 = vand.u32 127, %v159_v31  ;;  %s1765_s13 = smov 64   ;;  %s1766_s14 = smov 32  }
  0x29   :  { %1544 = vmatprep.subr.bf16.mxu0 %v1543_v3  ;;  %v1844_v10 = vld [vmem:[%s1997_s2] ss:$0 sm:$0xff]  ;;  %s1763_s2 = smov 96   ;;  %vm1865_vm2 = vmpackc.low %vm191_vm1, %vm191_vm1  ;;  %s1767_s15 = smov 80  }
  0x2a   :  { %1546 = vmatpush3.bf16.msra.mxu0 %v1543_v3  ;;  %vm178_vm3 = vcmp.ge.s32.totalorder %v1880_v32, 8  ;;  %vm179_vm4 = vcmp.lt.s32.totalorder %v1880_v32, 16  ;;  %vm168_vm6 = vcmp.lt.s32.totalorder %v1880_v32, 8  ;;  %s1768_s16 = smov 56   ;;  %s1769_s17 = smov 112  }
  0x2b   :  { %1548 = vmatprep.subr.bf16.mxu0 %v1547_v6  ;;  %vm1884_vm5 = vmand %vm178_vm3, %vm179_vm4  ;;  %s1770_s18 = smov 104   ;;  %s1771_s19 = smov 72  }
  0x2c   :  { %s1772_s20 = smov 48   ;;  %s1773_s21 = smov 40  }
  0x2d   :  { %s1774_s24 = smov [#allocation7]  }
  0x2e   :  { %1550 = vmatpush3.bf16.msra.mxu0 %v1547_v6  ;;  %s1351_s25 = sshll.u32 %s1774_s24, 4  ;;  %s1352_s25 = int_to_ptr.vmem [resolvable:$true] %s1351_s25 }
  0x2f   :  { %s1730_s26 = scalar_lea.vmem %s1352_s25, 256  ;;  %p1735_p3 = scmp.lt.s32.totalorder %s1352_s25, %s1352_s25 }
  0x30   :  { %p1731_p2 = scmp.ne.s32.totalorder %s1352_s25, %s1730_s26  ;;  %p1736_p4 = scmp.lt.s32.totalorder %s1730_s26, %s1730_s26 }
  0x31   :  { %1462 = vmatmul.mubr.msk.f32.vlgmr.msra.gmra.mrb[0].mxu0 %vm58_vm0, %v44_v7 }
  0x32   :  { %1464 = vmatprep.mubr.msk.f32.mxu0 %vm58_vm0, %v45_v8  ;;  %p1737_p5 = por %p1736_p4, %p1735_p3 }
  0x34   :  { %p1738_p6 = pnand %p1737_p5, %p1731_p2 }
  0x35   :  { %1465 = vmatmul.mubr.msk.f32.gmra.mrb[2].mxu0 %vm58_vm0, %v46_v9 }
 0x104   :  { %v1463_v11 = vpop.f32.mrb[0].mxu0 }
 0x105   :  { %v137_v12 = vpop.f32.mrb[1].mxu0  ;;  %v1854_v17 = vadd.f32 %v1463_v11, %v1844_v10 }
 0x106   :  { %v1847_v13 = vadd.f32 %v1844_v10, %v137_v12 }
 0x108   :  { %v1466_v14 = vpop.f32.mrb[2].mxu0  ;;  %389 = vrot.lane.b32.xlu1 %v1847_v13, %s1762_s11  ;;  %1471 = vmatprep.mubr.msk.f32.mxu1 %vm191_vm1, %v1847_v13 }
 0x109   :  { %v153_v15 = vadd.f32 %v1466_v14, %v1844_v10  ;;  %v147_v16 = vpop.f32.mrb[3].mxu0 }
 0x10a   :  { %v148_v18 = vadd.f32 %v1844_v10, %v147_v16 }
 0x10c   :  { %391 = vrot.lane.b32.xlu1 %v1854_v17, %s1762_s11  ;;  %v1858_v19 = vpack.i.bf16 %v153_v15, %v148_v18 }
 0x10e   :  { %1615 = vrot.lane.b32.xlu0 %v1858_v19, %s1763_s2 }
 0x112   :  { %1620 = vrot.lane.b32.xlu0 %v1858_v19, %s1764_s12 }
 0x17a   :  { %v390_v20 = vpop.permute.xlu1 %389 }
 0x17b   :  { %1485 = vmatprep.mubr.msk.f32.mxu0 %vm191_vm1, %v390_v20 }
 0x17e   :  { %v392_v30 = vpop.permute.xlu1 %391 }
 0x180   :  { %v1616_v21 = vpop.permute.xlu0 %1615 }
 0x181   :  { %v1618_v22 = vunpack.i.h.bf16 %v1616_v21  ;;  %v1617_v23 = vunpack.i.l.bf16 %v1616_v21 }
 0x183   :  { %v1551_v25 = vpack.c.bf16 %v1618_v22, %v1617_v23 }
 0x184   :  { %v1621_v26 = vpop.permute.xlu0 %1620 }
 0x185   :  { %v1623_v27 = vunpack.i.h.bf16 %v1621_v26  ;;  %v1622_v28 = vunpack.i.l.bf16 %v1621_v26  ;;  %1553 = vmatprep.subr.msk.bf16.mxu1 %vm1865_vm2, %v1551_v25 }
 0x186   :  { %1556 = vmatpush3.bf16.xpose.msk.msra.mxu1 %vm1865_vm2, %v1551_v25 }
 0x187   :  { %v1561_v29 = vpack.c.bf16 %v1623_v27, %v1622_v28 }
 0x189   :  { %1563 = vmatprep.subr.msk.bf16.mxu0 %vm1865_vm2, %v1561_v29 }
 0x18a   :  { %1566 = vmatpush3.bf16.xpose.msk.msra.mxu0 %vm1865_vm2, %v1561_v29 }
 0x18d   :  { %1472 = vmatmul.mubr.msk.f32.vlgmr.msra.gmra.mrb[0].mxu1 %vm191_vm1, %v1854_v17 }
 0x191   :  { %1486 = vmatmul.mubr.msk.f32.vlgmr.msra.gmra.mrb[4].mxu0 %vm191_vm1, %v392_v30 }
 0x260   :  { %v1473_v34 = vpop.f32.mrb[0].mxu1 }
 0x261   :  { %v278_v35 = vsel %vm1884_vm5, %v1473_v34, -1e+30  ;;  %v268_v36 = vpop.f32.mrb[1].mxu1 }
 0x262   :  { %v277_v37 = vsel %vm168_vm6, %v268_v36, -1e+30  ;;  %v283_v38 = vsel %vm279_vm7, %v278_v35, -inf }
 0x263   :  { %284 = vmax.xlane.f32.xlu1 %v283_v38  ;;  %v280_v39 = vsel %vm279_vm7, %v277_v37, -inf }
 0x264   :  { %v1487_v40 = vpop.f32.mrb[4].mxu0  ;;  %281 = vmax.xlane.f32.xlu0 %v280_v39 }
 0x265   :  { %v471_v41 = vpop.f32.mrb[5].mxu0  ;;  %v481_v44 = vsel %vm1884_vm5, %v1487_v40, -1e+30 }
 0x266   :  { %v480_v42 = vsel %vm168_vm6, %v471_v41, -1e+30  ;;  %v485_v45 = vsel %vm279_vm7, %v481_v44, -inf }
 0x267   :  { %v482_v43 = vsel %vm279_vm7, %v480_v42, -inf }
 0x268   :  { %483 = vmax.xlane.f32.xlu0 %v482_v43 }
 0x26c   :  { %486 = vmax.xlane.f32.xlu0 %v485_v45 }
 0x2f0   :  { %v285_v46 = vpop.xlane.xlu1 %284 }
 0x2f1   :  { %v287_v47 = vsub.f32 %v278_v35, %v285_v46  ;;  %v282_v48 = vpop.xlane.xlu0 %281 }
 0x2f2   :  { %v286_v49 = vsub.f32 %v277_v37, %v282_v48 }
 0x2f3   :  { %v290_v50 = vmul.f32 1.442695, %v287_v47 }
 0x2f4   :  { %v288_v51 = vmul.f32 1.442695, %v286_v49 }
 0x2f5   :  { %1654 = vpow2.f32 %v290_v50  ;;  %v484_v52 = vpop.xlane.xlu0 %483 }
 0x2f6   :  { %1656 = vpow2.f32 %v288_v51  ;;  %v488_v53 = vsub.f32 %v480_v42, %v484_v52 }
 0x2f8   :  { %v490_v54 = vmul.f32 1.442695, %v488_v53 }
 0x2f9   :  { %v487_v55 = vpop.xlane.xlu0 %486 }
 0x2fa   :  { %1658 = vpow2.f32 %v490_v54  ;;  %v489_v56 = vsub.f32 %v481_v44, %v487_v55 }
 0x2fc   :  { %v492_v57 = vmul.f32 1.442695, %v489_v56 }
 0x2fe   :  { %1660 = vpow2.f32 %v492_v57 }
 0x2ff   :  { %v1655_v58 = vpop.eup %1654 }
 0x300   :  { %v1657_v59 = vpop.eup %1656  ;;  %v295_v60 = vsel %vm279_vm7, %v1655_v58, 0.0 }
 0x301   :  { %296 = vadd.xlane.f32.xlu0 %v295_v60  ;;  %v292_v61 = vsel %vm279_vm7, %v1657_v59, 0.0 }
 0x302   :  { %293 = vadd.xlane.f32.xlu1 %v292_v61 }
 0x304   :  { %v1659_v62 = vpop.eup %1658 }
 0x305   :  { %v494_v63 = vsel %vm279_vm7, %v1659_v62, 0.0 }
 0x306   :  { %495 = vadd.xlane.f32.xlu1 %v494_v63 }
 0x308   :  { %v1661_v3 = vpop.eup %1660 }
 0x309   :  { %v497_v5 = vsel %vm279_vm7, %v1661_v3, 0.0 }
 0x30a   :  { %498 = vadd.xlane.f32.xlu0 %v497_v5 }
 0x317   :  { %1625 = vrot.lane.b32.xlu1 %v1858_v19, %s1765_s13 }
 0x31b   :  { %592 = vrot.lane.b32.xlu1 %v1827_v1, %s1766_s14 }
 0x31f   :  { %1635 = vrot.lane.b32.xlu1 %v1858_v19, %s1767_s15 }
 0x320   :  { %1630 = vrot.lane.b32.xlu0 %v1858_v19, %s1768_s16 }
 0x323   :  { %763 = vrot.lane.b32.xlu1 %v1854_v17, %s1769_s17 }
 0x324   :  { %761 = vrot.lane.b32.xlu0 %v1847_v13, %s1769_s17 }
 0x327   :  { %1050 = vrot.lane.b32.xlu1 %v1847_v13, %s1770_s18 }
 0x328   :  { %1640 = vrot.lane.b32.xlu0 %v1858_v19, %s1771_s19 }
 0x32c   :  { %1052 = vrot.lane.b32.xlu0 %v1854_v17, %s1770_s18 }
 0x38e   :  { %v297_v1 = vpop.xlane.xlu0 %296 }
 0x38f   :  { %v294_v6 = vpop.xlane.xlu1 %293 }
 0x390   :  { %1662 = vrcp.f32 %v294_v6 }
 0x391   :  { %1664 = vrcp.f32 %v297_v1 }
 0x393   :  { %v496_v7 = vpop.xlane.xlu1 %495 }
 0x394   :  { %1666 = vrcp.f32 %v496_v7 }
 0x397   :  { %v1626_v8 = vpop.permute.xlu1 %1625  ;;  %v499_v9 = vpop.xlane.xlu0 %498 }
 0x398   :  { %v1628_v11 = vunpack.i.h.bf16 %v1626_v8  ;;  %v1627_v12 = vunpack.i.l.bf16 %v1626_v8  ;;  %1668 = vrcp.f32 %v499_v9 }
 0x39a   :  { %v1663_v14 = vpop.eup %1662  ;;  %v1557_v15 = vpack.c.bf16 %v1628_v11, %v1627_v12 }
 0x39b   :  { %v1665_v16 = vpop.eup %1664  ;;  %v593_v13 = vpop.permute.xlu1 %592  ;;  %v300_v20 = vmul.f32 %v1663_v14, %v1657_v59 }
 0x39c   :  { %v1631_v18 = vpop.permute.xlu0 %1630  ;;  %1558 = vmatprep.subr.bf16.mxu1 %v1557_v15  ;;  %v301_v23 = vmul.f32 %v1665_v16, %v1655_v58 }
 0x39d   :  { %v1633_v21 = vunpack.i.h.bf16 %v1631_v18  ;;  %v1632_v22 = vunpack.i.l.bf16 %v1631_v18  ;;  %1560 = vmatpush3.bf16.msra.mxu1 %v1557_v15  ;;  %1478 = vmatprep.mubr.msk.f32.mxu1 %vm279_vm7, %v300_v20 }
 0x39e   :  { %v1667_v17 = vpop.eup %1666 }
 0x39f   :  { %v1567_v25 = vpack.c.bf16 %v1633_v21, %v1632_v22  ;;  %v1636_v26 = vpop.permute.xlu1 %1635  ;;  %v502_v27 = vmul.f32 %v1667_v17, %v1659_v62 }
 0x3a0   :  { %1479 = vmatmul.mubr.msk.f32.vlgmr.msra.gmra.mrb[2].mxu1 %vm279_vm7, %v301_v23  ;;  %v1638_v28 = vunpack.i.h.bf16 %v1636_v26  ;;  %v1637_v29 = vunpack.i.l.bf16 %v1636_v26  ;;  %v762_v35 = vpop.permute.xlu0 %761 }
 0x3a1   :  { %1568 = vmatprep.subr.bf16.mxu1 %v1567_v25  ;;  %1492 = vmatprep.mubr.msk.f32.mxu1 %vm279_vm7, %v502_v27 }
 0x3a2   :  { %1570 = vmatpush3.bf16.msra.mxu1 %v1567_v25  ;;  %v1669_v30 = vpop.eup %1668  ;;  %v1571_v34 = vpack.c.bf16 %v1638_v28, %v1637_v29 }
 0x3a3   :  { %1495 = vmatprep.subr.mxu1 %v593_v13  ;;  %v503_v31 = vmul.f32 %v1669_v30, %v1661_v3  ;;  %v764_v44 = vpop.permute.xlu1 %763 }
 0x3a4   :  { %v1641_v37 = vpop.permute.xlu0 %1640 }
 0x3a5   :  { %1493 = vmatmul.mubr.msk.f32.vlgmr.msra.gmra.mrb[4].mxu1 %vm279_vm7, %v503_v31  ;;  %v1643_v39 = vunpack.i.h.bf16 %v1641_v37  ;;  %v1642_v40 = vunpack.i.l.bf16 %v1641_v37 }
 0x3a6   :  { %1496 = vmatpush3.msra.mxu1 %v593_v13 }
 0x3a7   :  { %1573 = vmatprep.subr.msk.bf16.mxu1 %vm1865_vm2, %v1571_v34  ;;  %v1581_v43 = vpack.c.bf16 %v1643_v39, %v1642_v40  ;;  %v1051_v45 = vpop.permute.xlu1 %1050 }
 0x3a8   :  { %v1053_v46 = vpop.permute.xlu0 %1052 }
 0x473   :  { %v1921_v36 = vpop.f32.mrb[2].mxu1 }
 0x474   :  { %v380_v38 = vpop.f32.mrb[3].mxu1 }
 0x475   :  { %1502 = vmatprep.mubr.msk.f32.mxu0 %vm191_vm1, %v380_v38 }
 0x478   :  { %v1494_v41 = vpop.f32.mrb[4].mxu1 }
 0x479   :  { %v582_v42 = vpop.f32.mrb[5].mxu1 }
 0x47a   :  { %1497 = vmatprep.mubr.msk.f32.mxu1 %vm191_vm1, %v582_v42 }
 0x47b   :  { %1498 = vmatmul.mubr.msk.f32.vlgmr.msra.gmra.mrb[6].mxu1 %vm191_vm1, %v1494_v41 }
 0x47c   :  { %1576 = vmatpush3.bf16.xpose.msk.msra.mxu1 %vm1865_vm2, %v1571_v34  ;;  %1509 = vmatprep.mubr.msk.f32.mxu1 %vm191_vm1, %v762_v35 }
 0x47d   :  { %1583 = vmatprep.subr.msk.bf16.mxu1 %vm1865_vm2, %v1581_v43 }
 0x483   :  { %1510 = vmatmul.mubr.msk.f32.vlgmr.msra.gmra.mrb[8].mxu1 %vm191_vm1, %v764_v44 }
 0x484   :  { %1586 = vmatpush3.bf16.xpose.msk.msra.mxu1 %vm1865_vm2, %v1581_v43  ;;  %1528 = vmatprep.mubr.msk.f32.mxu1 %vm191_vm1, %v1051_v45 }
 0x48b   :  { %1529 = vmatmul.mubr.msk.f32.vlgmr.msra.gmra.mrb[10].mxu1 %vm191_vm1, %v1053_v46 }
 0x54e   :  { %v1936_v47 = vpop.f32.mrb[6].mxu1 }
 0x54f   :  { %v1938_v48 = vpop.f32.mrb[7].mxu1 }
 0x556   :  { %v1511_v49 = vpop.f32.mrb[8].mxu1 }
 0x557   :  { %v853_v50 = vsel %vm1884_vm5, %v1511_v49, -1e+30  ;;  %v843_v51 = vpop.f32.mrb[9].mxu1 }
 0x558   :  { %v852_v52 = vsel %vm168_vm6, %v843_v51, -1e+30  ;;  %v857_v24 = vsel %vm279_vm7, %v853_v50, -inf }
 0x559   :  { %858 = vmax.xlane.f32.xlu0 %v857_v24  ;;  %v854_v53 = vsel %vm279_vm7, %v852_v52, -inf }
 0x55a   :  { %855 = vmax.xlane.f32.xlu1 %v854_v53 }
 0x55e   :  { %v1530_v54 = vpop.f32.mrb[10].mxu1 }
 0x55f   :  { %v1132_v55 = vpop.f32.mrb[11].mxu1  ;;  %v1142_v6 = vsel %vm1884_vm5, %v1530_v54, -1e+30 }
 0x560   :  { %v1141_v1 = vsel %vm168_vm6, %v1132_v55, -1e+30  ;;  %v1146_v8 = vsel %vm279_vm7, %v1142_v6, -inf }
 0x561   :  { %v1143_v7 = vsel %vm279_vm7, %v1141_v1, -inf }
 0x5e6   :  { %v859_v56 = vpop.xlane.xlu0 %858 }
 0x5e7   :  { %v861_v57 = vsub.f32 %v853_v50, %v859_v56  ;;  %v856_v58 = vpop.xlane.xlu1 %855 }
 0x5e8   :  { %v860_v59 = vsub.f32 %v852_v52, %v856_v58 }
 0x5e9   :  { %v864_v60 = vmul.f32 1.442695, %v861_v57 }
 0x5ea   :  { %v862_v61 = vmul.f32 1.442695, %v860_v59 }
 0x5eb   :  { %1670 = vpow2.f32 %v864_v60 }
 0x5ec   :  { %1672 = vpow2.f32 %v862_v61 }
 0x5f5   :  { %v1671_v62 = vpop.eup %1670 }
 0x5f6   :  { %v1673_v63 = vpop.eup %1672  ;;  %v869_v3 = vsel %vm279_vm7, %v1671_v62, 0.0 }
 0x5f7   :  { %870 = vadd.xlane.f32.xlu1 %v869_v3  ;;  %v866_v5 = vsel %vm279_vm7, %v1673_v63, 0.0 }
 0x5f8   :  { %867 = vadd.xlane.f32.xlu0 %v866_v5 }
 0x608   :  { %1645 = vrot.lane.b32.xlu1 %v1858_v19, %s1772_s20 }
 0x60e   :  { %677 = vrot.lane.b32.xlu0 %v1825_v0, %s1766_s14 }
 0x62c   :  { %1144 = vmax.xlane.f32.xlu1 %v1143_v7 }
 0x62d   :  { %1147 = vmax.xlane.f32.xlu0 %v1146_v8 }
 0x684   :  { %v871_v9 = vpop.xlane.xlu1 %870 }
 0x685   :  { %1674 = vrcp.f32 %v871_v9  ;;  %v868_v11 = vpop.xlane.xlu0 %867 }
 0x686   :  { %1676 = vrcp.f32 %v868_v11 }
 0x688   :  { %v1646_v12 = vpop.permute.xlu1 %1645 }
 0x689   :  { %v1648_v14 = vunpack.i.h.bf16 %v1646_v12  ;;  %v1647_v15 = vunpack.i.l.bf16 %v1646_v12  ;;  %v678_v0 = vpop.permute.xlu0 %677 }
 0x68a   :  { %1500 = vmatprep.subr.mxu0 %v678_v0 }
 0x68b   :  { %v1577_v32 = vpack.c.bf16 %v1648_v14, %v1647_v15  ;;  %1501 = vmatpush3.msra.mxu0 %v678_v0 }
 0x68c   :  { %1503 = vmatmul.mubr.msk.f32.vlgmr.msra.gmra.mrb[6].mxu0 %vm191_vm1, %v1921_v36 }
 0x68d   :  { %1578 = vmatprep.subr.bf16.mxu0 %v1577_v32 }
 0x68e   :  { %1580 = vmatpush3.bf16.msra.mxu0 %v1577_v32 }
 0x68f   :  { %v1675_v33 = vpop.eup %1674 }
 0x690   :  { %v1677_v16 = vpop.eup %1676  ;;  %v875_v18 = vmul.f32 %v1675_v33, %v1671_v62 }
 0x691   :  { %v874_v13 = vmul.f32 %v1677_v16, %v1673_v63 }
 0x693   :  { %1516 = vmatprep.mubr.msk.f32.mxu0 %vm279_vm7, %v874_v13 }
 0x694   :  { %1517 = vmatmul.mubr.msk.f32.vlgmr.msra.gmra.mrb[8].mxu0 %vm279_vm7, %v875_v18 }
 0x6b9   :  { %v1145_v20 = vpop.xlane.xlu1 %1144 }
 0x6ba   :  { %v1149_v21 = vsub.f32 %v1141_v1, %v1145_v20  ;;  %v1148_v22 = vpop.xlane.xlu0 %1147 }
 0x6bb   :  { %v1150_v17 = vsub.f32 %v1142_v6, %v1148_v22 }
 0x6bc   :  { %v1151_v23 = vmul.f32 1.442695, %v1149_v21 }
 0x6bd   :  { %v1153_v25 = vmul.f32 1.442695, %v1150_v17 }
 0x6be   :  { %1678 = vpow2.f32 %v1151_v23 }
 0x6bf   :  { %1680 = vpow2.f32 %v1153_v25 }
 0x6c8   :  { %v1679_v26 = vpop.eup %1678 }
 0x6c9   :  { %v1681_v27 = vpop.eup %1680  ;;  %v1155_v28 = vsel %vm279_vm7, %v1679_v26, 0.0 }
 0x6ca   :  { %1156 = vadd.xlane.f32.xlu0 %v1155_v28  ;;  %v1158_v29 = vsel %vm279_vm7, %v1681_v27, 0.0 }
 0x6cb   :  { %1159 = vadd.xlane.f32.xlu1 %v1158_v29 }
 0x6dc   :  { %1650 = vrot.lane.b32.xlu1 %v1858_v19, %s1773_s21 }
 0x6e0   :  { %964 = vrot.lane.b32.xlu0 %v1829_v2, %s1766_s14  ;;  %1253 = vrot.lane.b32.xlu1 %v1833_v4, %s1766_s14 }
 0x6e4   :  { %1339 = vrot.lane.b32.xlu0 %v1844_v10, %s1766_s14 }
 0x757   :  { %v1157_v30 = vpop.xlane.xlu0 %1156 }
 0x758   :  { %v1160_v31 = vpop.xlane.xlu1 %1159  ;;  %1682 = vrcp.f32 %v1157_v30 }
 0x759   :  { %1684 = vrcp.f32 %v1160_v31 }
 0x75b   :  { %v965_v34 = vpop.permute.xlu0 %964 }
 0x75c   :  { %v1651_v35 = vpop.permute.xlu1 %1650  ;;  %1519 = vmatprep.subr.mxu0 %v965_v34 }
 0x75d   :  { %v1653_v36 = vunpack.i.h.bf16 %v1651_v35  ;;  %v1652_v37 = vunpack.i.l.bf16 %v1651_v35  ;;  %1520 = vmatpush3.msra.mxu0 %v965_v34 }
 0x75f   :  { %v1587_v19 = vpack.c.bf16 %v1653_v36, %v1652_v37  ;;  %v1340_v45 = vpop.permute.xlu0 %1339 }
 0x760   :  { %v1254_v10 = vpop.permute.xlu1 %1253 }
 0x761   :  { %1588 = vmatprep.subr.bf16.mxu0 %v1587_v19 }
 0x762   :  { %v1683_v38 = vpop.eup %1682 }
 0x763   :  { %v1685_v40 = vpop.eup %1684  ;;  %v1163_v4 = vmul.f32 %v1683_v38, %v1679_v26 }
 0x764   :  { %v1164_v41 = vmul.f32 %v1685_v40, %v1681_v27 }
 0x767   :  { %v1518_v2 = vpop.f32.mrb[8].mxu0 }
 0x768   :  { %v954_v39 = vpop.f32.mrb[9].mxu0 }
 0x769   :  { %1521 = vmatprep.mubr.msk.f32.mxu0 %vm191_vm1, %v954_v39 }
 0x76a   :  { %1522 = vmatmul.mubr.msk.f32.vlgmr.msra.gmra.mrb[6].mxu0 %vm191_vm1, %v1518_v2 }
 0x76b   :  { %1590 = vmatpush3.bf16.msra.mxu0 %v1587_v19  ;;  %1535 = vmatprep.mubr.msk.f32.mxu0 %vm279_vm7, %v1163_v4 }
 0x76c   :  { %1538 = vmatprep.subr.mxu0 %v1254_v10 }
 0x76e   :  { %1536 = vmatmul.mubr.msk.f32.vlgmr.msra.gmra.mrb[10].mxu0 %vm279_vm7, %v1164_v41 }
 0x76f   :  { %1539 = vmatpush3.msra.mxu0 %v1254_v10 }
 0x841   :  { %v1537_v42 = vpop.f32.mrb[10].mxu0 }
 0x842   :  { %v1243_v43 = vpop.f32.mrb[11].mxu0 }
 0x843   :  { %1540 = vmatprep.mubr.msk.f32.mxu0 %vm191_vm1, %v1243_v43 }
 0x844   :  { %1541 = vmatmul.mubr.msk.f32.vlgmr.msra.gmra.mrb[6].mxu0 %vm191_vm1, %v1537_v42 }
 0x917   :  { %v1542_v44 = vpop.f32.mrb[6].mxu0 }
 0x918   :  { %v1591_v46 = vadd.f32 %v1542_v44, %v1936_v47  ;;  %v1328_v49 = vpop.f32.mrb[7].mxu0 }
 0x919   :  { %v1592_v50 = vadd.f32 %v1328_v49, %v1938_v48 }
 0x91a   :  { %v1343_v51 = vadd.f32 %v1591_v46, %v1340_v45 }
 0x91b   :  { %v1342_v52 = vadd.f32 %v1592_v50, %v1340_v45 }
 0x91c   :  { %1345 = vst.msk [vmem:[#allocation7 + $0x8] sm:$0xff] %vm58_vm0, %v1343_v51 }
 0x91d   :  { %1344 = vst.msk [vmem:[#allocation7] sm:$0xff] %vm58_vm0, %v1342_v52 }
 0x91e   :  { %1741 = shalt.err (!%p1738_p6)
}
 0x91f   :  { %s1742_s29 = scalar_lea.hbm %s1998_s3, 256 }
 0x920   :  { %p1743_p7 = scmp.ne.s32.totalorder %s1998_s3, %s1742_s29  ;;  %p1746_p8 = scmp.lt.u32.totalorder %s1742_s29, %s1998_s3 }
 0x922   :  { %p1748_p9 = pnand %p1746_p8, %p1743_p7 }
 0x924   :  { %1751 = shalt.err (!%p1748_p9)
}
 0x925   :  { %1357 = dma.vmem_to_hbm [thread:$0]  %s1352_s25, 256, %s1998_s3, [#allocation4], %s1759_s22, %s1759_s22, %s1760_s23  }
 0x926   :  { %1756 = dma.done.wait [#allocation4], 256  }
 0x927   :  { %1757 = vsyncadd [#allocation4], 4294967040 }
 0x928   :  { %1361 = vsyncpa [#allocation3], 1 }
 0x929   :  { %1362 = vsyncpa [#allocation6], 1 }
 0x92a   :  { %1363 = vsyncpa [#allocation4], 1 }

</bundles_post_ra>
